<compile_context>
chip_gen: v7x
topology: tpu7x:2x2x1
jax: 0.10.0
libtpu: 0.0.40
codegen_flags: <defaults>
</compile_context>

<pallas_src>
import jax
import jax.numpy as jnp
from jax.experimental import pallas as pl
from jax.experimental.pallas import tpu as pltpu


# ----------------------------------------------------------------------------- kernel
def aggregator_kernel(rel_ref, nbr_ref, user_ref, self_ref,
                      w1a_ref, w1b_ref, b1_ref, w2_ref, b2_ref,
                      out_ref):
    # rel_ref/nbr_ref: (TB, N, D), user_ref/self_ref: (TB, D)
    # w1a_ref/w1b_ref: (D, D), b1_ref: (1, D), w2_ref: (1, D), b2_ref: (1,) SMEM
    # out_ref: (TB, 2*D)  -- [ self_vectors | aggregated neighbors ]
    tb, n, d = rel_ref.shape
    f32 = jnp.float32

    # relu(concat([user_expanded, rel], -1) @ W1^T + b1)
    #   == relu(user @ W1a + rel @ W1b + b1)
    # Feed the MXU its native (possibly bf16) inputs; accumulate in f32.
    hu = jnp.dot(user_ref[...], w1a_ref[...],
                 preferred_element_type=f32)                        # (TB, D)
    hr = jnp.dot(rel_ref[...].reshape(tb * n, d), w1b_ref[...],
                 preferred_element_type=f32)                        # (TB*N, D) one flat MXU dot
    hidden = hr.reshape(tb, n, d) + hu[:, None, :] + b1_ref[...].astype(f32)[None, :, :]
    hidden = jnp.maximum(hidden, 0.0)                               # (TB, N, D)

    # attention logit = hidden @ w2^T + b2 as a VPU multiply + lane reduce
    # (avoids a width-1 MXU matmul); b2 comes from SMEM as a scalar.
    w2row = w2_ref[...].astype(f32)                                 # (1, D)
    logits = jnp.sum(hidden * w2row[None, :, :],
                     axis=-1, keepdims=True)                        # (TB, N, 1)
    decay = jax.nn.sigmoid(logits + b2_ref[0])                      # values in (0, 1)

    # softmax over the neighbor axis; sigmoid outputs are bounded so the
    # max-subtraction is unnecessary; exact reciprocal (operand is tiny).
    e = jnp.exp(decay)                                              # (TB, N, 1)
    denom = jnp.sum(e, axis=1, keepdims=True)                       # (TB, 1, 1)
    attn = e * pl.reciprocal(denom)                                 # (TB, N, 1)

    # attention-weighted sum over neighbors; cast nbr at point of use only.
    agg = jnp.sum(attn * nbr_ref[...].astype(f32), axis=1)          # (TB, D)

    # fused epilogue: single lane-dense store of [self | agg].
    out = jnp.concatenate([self_ref[...].astype(f32), agg], axis=-1)
    out_ref[...] = out.astype(out_ref.dtype)


# ----------------------------------------------------------------------------- wrapper
def _round_up(x, m):
    return ((x + m - 1) // m) * m


def _tpu_vmem_capacity_bytes():
    try:
        info = pltpu.get_tpu_info()
        cap = getattr(info, "vmem_capacity_bytes", None)
        if cap:
            return int(cap)
    except Exception:
        pass
    return 64 << 20   # conservative (v7x-sized) fallback


def _choose_tile_b(batch, n, d, in_itemsize, vmem_cap):
    """Batch tile from a generation-aware VMEM budget.

    Counts BOTH the double-buffered HBM streams and the in-kernel f32
    temporaries (hr, hidden, nbr cast, ...), so tiles sized for v5e/v6e
    (128 MiB VMEM) do not OOM/spill on v7x (64 MiB VMEM).
    """
    d_pad = _round_up(max(d, 1), 128)                       # lane padding
    n_pad = _round_up(max(n, 1), 8)                         # sublane padding
    # streamed bytes / row: rel + nbr (N,D each) + user + self + out(2D); x2 double-buffer
    stream = (2 * n_pad * d_pad + 4 * d_pad) * in_itemsize * 2
    # f32 in-kernel temporaries / row: hr, hidden, nbr cast, hu, agg, ...
    temps = (3 * n_pad * d_pad + 4 * d_pad) * 4
    per_row = stream + temps
    budget = min(vmem_cap // 3, 48 << 20)                   # ~21 MiB on v7x, ~42 MiB on v5e/v6e
    tb = (budget // per_row) // 8 * 8
    tb = max(8, min(int(tb), 1024))
    # keep >= ~4 grid steps: megacore sharding + pipelining need iterations
    tb = min(tb, max(8, _round_up(pl.cdiv(batch, 4), 8)))
    return int(tb)


def prepare_aggregator_params(params, *, matmul_dtype=None):
    """Hoist the W1 transpose/split and reshapes out of the per-call path.

    Pass matmul_dtype=jnp.bfloat16 when activations are stored in bf16 so the
    MXU runs at its native low-precision rate; the f32 epilogue is unchanged.
    """
    w1 = params['att_w1']      # (D, 2D)  torch Linear weight (out, in)
    b1 = params['att_b1']      # (D,)
    w2 = params['att_w2']      # (1, D)
    b2 = params['att_b2']      # (1,)
    D = b1.shape[0]
    w1t = jnp.asarray(w1).T    # (2D, D)
    w1a = w1t[:D]              # multiplies the (expanded) user embedding
    w1b = w1t[D:]              # multiplies the neighbor relation
    if matmul_dtype is not None:
        w1a = w1a.astype(matmul_dtype)
        w1b = w1b.astype(matmul_dtype)
    return {
        'w1a': w1a,
        'w1b': w1b,
        'b1': jnp.asarray(b1).reshape(1, D).astype(jnp.float32),
        'w2_row': jnp.asarray(w2).reshape(1, D).astype(jnp.float32),
        'b2': jnp.asarray(b2).reshape(1).astype(jnp.float32),
    }


def aggregator_forward(self_vectors, neighbor_vectors, neighbor_relations,
                       user_embeddings, prepared, *, tile_b=None, buffer_depth=None):
    B, _, N, D = neighbor_relations.shape
    dtype = self_vectors.dtype
    itemsize = jnp.dtype(neighbor_relations.dtype).itemsize

    nbr = neighbor_vectors.reshape(B, N, D)
    rel = neighbor_relations.reshape(B, N, D)
    user = user_embeddings
    selfv = self_vectors.reshape(B, D)

    vmem_cap = _tpu_vmem_capacity_bytes()
    if tile_b is None:
        tile_b = _choose_tile_b(B, N, D, itemsize, vmem_cap)
    if tile_b >= B:
        tile_b = B                       # single exact block, no ragged tail
    # No wrapper-side padding: Pallas masks the ragged last block.  OOB rows
    # only feed per-row (softmax-over-N) math and are never stored.
    grid = (pl.cdiv(B, tile_b),)

    def stream_spec():
        if buffer_depth is not None and buffer_depth != 2:
            return pl.BlockSpec((tile_b, N, D), lambda i: (i, 0, 0),
                                pipeline_mode=pl.Buffered(buffer_depth))
        return pl.BlockSpec((tile_b, N, D), lambda i: (i, 0, 0))

    out2 = pl.pallas_call(
        aggregator_kernel,
        out_shape=jax.ShapeDtypeStruct((B, 2 * D), dtype),
        grid=grid,
        in_specs=[
            stream_spec(),                                        # neighbor_relations
            stream_spec(),                                        # neighbor_vectors
            pl.BlockSpec((tile_b, D), lambda i: (i, 0)),          # user_embeddings
            pl.BlockSpec((tile_b, D), lambda i: (i, 0)),          # self_vectors
            pl.BlockSpec((D, D), lambda i: (0, 0)),               # W1a (VMEM resident)
            pl.BlockSpec((D, D), lambda i: (0, 0)),               # W1b (VMEM resident)
            pl.BlockSpec((1, D), lambda i: (0, 0)),               # b1
            pl.BlockSpec((1, D), lambda i: (0, 0)),               # w2 row
            pl.BlockSpec(memory_space=pltpu.MemorySpace.SMEM),    # b2 scalar
        ],
        out_specs=pl.BlockSpec((tile_b, 2 * D), lambda i: (i, 0)),
        compiler_params=pltpu.CompilerParams(
            dimension_semantics=("parallel",),                    # megacore on v7x
            vmem_limit_bytes=int(min(vmem_cap * 3 // 4, 96 << 20)),  # <=48 MiB v7x, <=96 MiB v5e/v6e
        ),
    )(rel, nbr, user, selfv,
      prepared['w1a'], prepared['w1b'], prepared['b1'],
      prepared['w2_row'], prepared['b2'])

    return out2.reshape(B, 1, 2 * D)


# ----------------------------------------------------------------------------- reference / init
def reference_forward(self_vectors, neighbor_vectors, neighbor_relations,
                      user_embeddings, params):
    """Pure-JAX mirror of the PyTorch forward, for verification."""
    B, _, N, D = neighbor_relations.shape
    w1, b1 = params['att_w1'], params['att_b1']
    w2, b2 = params['att_w2'], params['att_b2']
    self_exp = jnp.broadcast_to(user_embeddings.reshape(B, 1, 1, D), (B, 1, N, D))
    hrc = jnp.concatenate([self_exp, neighbor_relations], -1)        # (B,1,N,2D)
    hidden = jax.nn.relu(hrc @ w1.T + b1)                             # (B,1,N,D)
    decay = jax.nn.sigmoid(hidden @ w2.T + b2)                        # (B,1,N,1)
    decay = jax.nn.softmax(decay, axis=2)
    nbr = jnp.sum(decay * neighbor_vectors, axis=2)                   # (B,1,D)
    return jnp.concatenate([self_vectors, nbr], axis=-1)              # (B,1,2D)


def init_params(key, dim):
    ks = jax.random.split(key, 6)

    def lin(k_w, k_b, out_f, in_f):
        bound = 1.0 / jnp.sqrt(in_f)
        w = jax.random.uniform(k_w, (out_f, in_f), jnp.float32, -bound, bound)
        b = jax.random.uniform(k_b, (out_f,), jnp.float32, -bound, bound)
        return w, b

    att_w1, att_b1 = lin(ks[0], ks[1], dim, 2 * dim)
    att_w2, att_b2 = lin(ks[2], ks[3], 1, dim)
    # `self.weights` Linear is defined in __init__ but unused in forward();
    # initialized only for shape completeness.
    agg_w, agg_b = lin(ks[4], ks[5], dim, dim)
    return {'att_w1': att_w1, 'att_b1': att_b1,
            'att_w2': att_w2, 'att_b2': att_b2,
            'agg_w': agg_w, 'agg_b': agg_b}


if __name__ == "__main__":
    B, N, D = 2, 8, 32
    key = jax.random.PRNGKey(0)
    k1, k2, k3, k4, kp = jax.random.split(key, 5)

    self_vectors = jax.random.normal(k1, (B, 1, D), jnp.float32)
    neighbor_vectors = jax.random.normal(k2, (B, 1, N, D), jnp.float32)
    neighbor_relations = jax.random.normal(k3, (B, 1, N, D), jnp.float32)
    user_embeddings = jax.random.normal(k4, (B, D), jnp.float32)
    params = init_params(kp, D)

    prepared = prepare_aggregator_params(params)   # hoisted out of the call path

    out = aggregator_forward(self_vectors, neighbor_vectors,
                             neighbor_relations, user_embeddings, prepared)
    out = jax.block_until_ready(out)

    ref = reference_forward(self_vectors, neighbor_vectors,
                            neighbor_relations, user_embeddings, params)
    assert out.shape == (B, 1, 2 * D)
    # tolerance covers TPU default matmul precision + the split-concat dot order
    assert jnp.allclose(out, ref, atol=2e-3, rtol=2e-3), "mismatch vs reference"

    print("KERNEL_OK")
</pallas_src>

<mosaic_0001>
module attributes {stable_mosaic.version = 11 : i64} {
  func.func @aggregator_kernel(%arg0: i32, %arg1: memref<2x8x32xf32, #tpu.memory_space<vmem>>, %arg2: memref<2x8x32xf32, #tpu.memory_space<vmem>>, %arg3: memref<2x32xf32, #tpu.memory_space<vmem>>, %arg4: memref<2x32xf32, #tpu.memory_space<vmem>>, %arg5: memref<32x32xf32, #tpu.memory_space<vmem>>, %arg6: memref<32x32xf32, #tpu.memory_space<vmem>>, %arg7: memref<1x32xf32, #tpu.memory_space<vmem>>, %arg8: memref<1x32xf32, #tpu.memory_space<vmem>>, %arg9: memref<1xf32, #tpu.memory_space<smem>>, %arg10: memref<2x64xf32, #tpu.memory_space<vmem>>) attributes {dimension_semantics = [#tpu.dimension_semantics<parallel>], iteration_bounds = array<i64: 1>, scalar_prefetch = 0 : i64, scratch_operands = 0 : i64, tpu.core_type = #tpu.core_type<tc>, window_params = [{transform_indices = @transform_0, window_bounds = array<i64: 2, 8, 32>}, {transform_indices = @transform_1, window_bounds = array<i64: 2, 8, 32>}, {transform_indices = @transform_2, window_bounds = array<i64: 2, 32>}, {transform_indices = @transform_3, window_bounds = array<i64: 2, 32>}, {pipeline_mode = #tpu.pipeline_mode<synchronous>, transform_indices = @transform_4, window_bounds = array<i64: 32, 32>}, {pipeline_mode = #tpu.pipeline_mode<synchronous>, transform_indices = @transform_5, window_bounds = array<i64: 32, 32>}, {pipeline_mode = #tpu.pipeline_mode<synchronous>, transform_indices = @transform_6, window_bounds = array<i64: 1, 32>}, {pipeline_mode = #tpu.pipeline_mode<synchronous>, transform_indices = @transform_7, window_bounds = array<i64: 1, 32>}, {transform_indices = @transform_8, window_bounds = array<i64: 1>}, {transform_indices = @transform_9, window_bounds = array<i64: 2, 64>}]} {
    %c0 = arith.constant 0 : index
    %c0_0 = arith.constant 0 : index
    %0 = vector.load %arg3[%c0, %c0_0] : memref<2x32xf32, #tpu.memory_space<vmem>>, vector<2x32xf32>
    %c0_1 = arith.constant 0 : index
    %c0_2 = arith.constant 0 : index
    %1 = vector.load %arg5[%c0_1, %c0_2] : memref<32x32xf32, #tpu.memory_space<vmem>>, vector<32x32xf32>
    %cst = arith.constant dense<0.000000e+00> : vector<2x32xf32>
    %2 = tpu.matmul %0, %1, %cst {dimension_numbers = #tpu.dot_dimension_numbers<[1], [0], [0], [1], [0, 0, 1, 1], [], []>} : vector<2x32xf32>, vector<32x32xf32>, vector<2x32xf32> -> vector<2x32xf32>
    %c0_3 = arith.constant 0 : index
    %c0_4 = arith.constant 0 : index
    %c0_5 = arith.constant 0 : index
    %3 = vector.load %arg1[%c0_3, %c0_4, %c0_5] : memref<2x8x32xf32, #tpu.memory_space<vmem>>, vector<2x8x32xf32>
    %4 = vector.shape_cast %3 : vector<2x8x32xf32> to vector<16x32xf32>
    %c0_6 = arith.constant 0 : index
    %c0_7 = arith.constant 0 : index
    %5 = vector.load %arg6[%c0_6, %c0_7] : memref<32x32xf32, #tpu.memory_space<vmem>>, vector<32x32xf32>
    %cst_8 = arith.constant dense<0.000000e+00> : vector<16x32xf32>
    %6 = tpu.matmul %4, %5, %cst_8 {dimension_numbers = #tpu.dot_dimension_numbers<[1], [0], [0], [1], [0, 0, 1, 1], [], []>} : vector<16x32xf32>, vector<32x32xf32>, vector<16x32xf32> -> vector<16x32xf32>
    %7 = vector.shape_cast %6 : vector<16x32xf32> to vector<2x8x32xf32>
    %8 = vector.shape_cast %2 : vector<2x32xf32> to vector<2x1x32xf32>
    %9 = vector.broadcast %8 : vector<2x1x32xf32> to vector<2x8x32xf32>
    %10 = arith.addf %7, %9 : vector<2x8x32xf32>
    %c0_9 = arith.constant 0 : index
    %c0_10 = arith.constant 0 : index
    %11 = vector.load %arg7[%c0_9, %c0_10] : memref<1x32xf32, #tpu.memory_space<vmem>>, vector<1x32xf32>
    %12 = vector.shape_cast %11 : vector<1x32xf32> to vector<1x1x32xf32>
    %13 = vector.broadcast %12 : vector<1x1x32xf32> to vector<2x8x32xf32>
    %14 = arith.addf %10, %13 : vector<2x8x32xf32>
    %cst_11 = arith.constant 0.000000e+00 : f32
    %15 = vector.broadcast %cst_11 : f32 to vector<2x8x32xf32>
    %16 = arith.maximumf %14, %15 : vector<2x8x32xf32>
    %c0_12 = arith.constant 0 : index
    %c0_13 = arith.constant 0 : index
    %17 = vector.load %arg8[%c0_12, %c0_13] : memref<1x32xf32, #tpu.memory_space<vmem>>, vector<1x32xf32>
    %18 = vector.shape_cast %17 : vector<1x32xf32> to vector<1x1x32xf32>
    %19 = vector.broadcast %18 : vector<1x1x32xf32> to vector<2x8x32xf32>
    %20 = arith.mulf %16, %19 : vector<2x8x32xf32>
    %cst_14 = arith.constant dense<0.000000e+00> : vector<2x8xf32>
    %21 = vector.multi_reduction <add>, %20, %cst_14 [2] : vector<2x8x32xf32> to vector<2x8xf32>
    %22 = vector.shape_cast %21 : vector<2x8xf32> to vector<2x8x1xf32>
    %c0_15 = arith.constant 0 : index
    %23 = memref.load %arg9[%c0_15] : memref<1xf32, #tpu.memory_space<smem>>
    %24 = vector.broadcast %23 : f32 to vector<2x8x1xf32>
    %25 = arith.addf %22, %24 : vector<2x8x1xf32>
    %26 = arith.negf %25 : vector<2x8x1xf32>
    %27 = math.exp %26 : vector<2x8x1xf32>
    %cst_16 = arith.constant 1.000000e+00 : f32
    %28 = vector.broadcast %cst_16 : f32 to vector<2x8x1xf32>
    %29 = arith.addf %28, %27 : vector<2x8x1xf32>
    %30 = arith.divf %28, %29 : vector<2x8x1xf32>
    %31 = math.exp %30 : vector<2x8x1xf32>
    %cst_17 = arith.constant dense<0.000000e+00> : vector<2x1xf32>
    %32 = vector.multi_reduction <add>, %31, %cst_17 [1] : vector<2x8x1xf32> to vector<2x1xf32>
    %33 = vector.shape_cast %32 : vector<2x1xf32> to vector<2x1x1xf32>
    %34 = tpu.reciprocal %33 : vector<2x1x1xf32> -> vector<2x1x1xf32>
    %35 = vector.broadcast %34 : vector<2x1x1xf32> to vector<2x8x1xf32>
    %36 = arith.mulf %31, %35 : vector<2x8x1xf32>
    %c0_18 = arith.constant 0 : index
    %c0_19 = arith.constant 0 : index
    %c0_20 = arith.constant 0 : index
    %37 = vector.load %arg2[%c0_18, %c0_19, %c0_20] : memref<2x8x32xf32, #tpu.memory_space<vmem>>, vector<2x8x32xf32>
    %38 = vector.broadcast %36 : vector<2x8x1xf32> to vector<2x8x32xf32>
    %39 = arith.mulf %38, %37 : vector<2x8x32xf32>
    %cst_21 = arith.constant dense<0.000000e+00> : vector<2x32xf32>
    %40 = vector.multi_reduction <add>, %39, %cst_21 [1] : vector<2x8x32xf32> to vector<2x32xf32>
    %c0_22 = arith.constant 0 : index
    %c0_23 = arith.constant 0 : index
    %41 = vector.load %arg4[%c0_22, %c0_23] : memref<2x32xf32, #tpu.memory_space<vmem>>, vector<2x32xf32>
    %42 = tpu.concatenate %41, %40 in 1 : vector<2x32xf32>, vector<2x32xf32> -> vector<2x64xf32>
    %c0_24 = arith.constant 0 : index
    %c0_25 = arith.constant 0 : index
    %43 = vector.load %arg10[%c0_24, %c0_25] : memref<2x64xf32, #tpu.memory_space<vmem>>, vector<2x64xf32>
    tpu.vector_store %arg10[%c0_24, %c0_25], %42 {strides = array<i32>} : memref<2x64xf32, #tpu.memory_space<vmem>>, vector<2x64xf32>,
    return
  }
  func.func @transform_0(%arg0: i32) -> (i32, i32, i32) {
    %c0_i32 = arith.constant 0 : i32
    %c0_i32_0 = arith.constant 0 : i32
    %c0_i32_1 = arith.constant 0 : i32
    return %arg0, %c0_i32, %c0_i32_0 : i32, i32, i32
  }
  func.func @transform_1(%arg0: i32) -> (i32, i32, i32) {
    %c0_i32 = arith.constant 0 : i32
    %c0_i32_0 = arith.constant 0 : i32
    %c0_i32_1 = arith.constant 0 : i32
    return %arg0, %c0_i32, %c0_i32_0 : i32, i32, i32
  }
  func.func @transform_2(%arg0: i32) -> (i32, i32) {
    %c0_i32 = arith.constant 0 : i32
    %c0_i32_0 = arith.constant 0 : i32
    return %arg0, %c0_i32 : i32, i32
  }
  func.func @transform_3(%arg0: i32) -> (i32, i32) {
    %c0_i32 = arith.constant 0 : i32
    %c0_i32_0 = arith.constant 0 : i32
    return %arg0, %c0_i32 : i32, i32
  }
  func.func @transform_4(%arg0: i32) -> (i32, i32) {
    %c0_i32 = arith.constant 0 : i32
    %c0_i32_0 = arith.constant 0 : i32
    %c0_i32_1 = arith.constant 0 : i32
    return %c0_i32, %c0_i32_0 : i32, i32
  }
  func.func @transform_5(%arg0: i32) -> (i32, i32) {
    %c0_i32 = arith.constant 0 : i32
    %c0_i32_0 = arith.constant 0 : i32
    %c0_i32_1 = arith.constant 0 : i32
    return %c0_i32, %c0_i32_0 : i32, i32
  }
  func.func @transform_6(%arg0: i32) -> (i32, i32) {
    %c0_i32 = arith.constant 0 : i32
    %c0_i32_0 = arith.constant 0 : i32
    %c0_i32_1 = arith.constant 0 : i32
    return %c0_i32, %c0_i32_0 : i32, i32
  }
  func.func @transform_7(%arg0: i32) -> (i32, i32) {
    %c0_i32 = arith.constant 0 : i32
    %c0_i32_0 = arith.constant 0 : i32
    %c0_i32_1 = arith.constant 0 : i32
    return %c0_i32, %c0_i32_0 : i32, i32
  }
  func.func @transform_8(%arg0: i32) -> i32 {
    %c0_i32 = arith.constant 0 : i32
    %c0_i32_0 = arith.constant 0 : i32
    return %c0_i32 : i32
  }
  func.func @transform_9(%arg0: i32) -> (i32, i32) {
    %c0_i32 = arith.constant 0 : i32
    %c0_i32_0 = arith.constant 0 : i32
    return %arg0, %c0_i32 : i32, i32
  }
}

</mosaic_0001>

<bundles_post_ra>
// kernel: tpu_custom_call.1
= control target key start
LH: loop header
LB: loop body
LE: loop exit
PB: predicated region body
PF: predicated region fallthrough
CT: control target
= control target key end

     0   :  { %15 = vsyncpa [#allocation4], 0  ;;  %s769_s0 = inlined_call_operand.hbm [shape: f32[2,8,32], index: 0, kind: input, shape index: {}]   ;;  %s770_s1 = inlined_call_operand.hbm [shape: f32[2,8,32], index: 1, kind: input, shape index: {}]   ;;  %s771_s2 = inlined_call_operand.vmem [shape: f32[2,32], index: 2, kind: input, shape index: {}]   ;;  %s772_s3 = inlined_call_operand.vmem [shape: f32[2,32], index: 3, kind: input, shape index: {}]   ;;  %s773_s4 = inlined_call_operand.hbm [shape: f32[32,32], index: 4, kind: input, shape index: {}]   ;;  %s774_s5 = inlined_call_operand.hbm [shape: f32[32,32], index: 5, kind: input, shape index: {}]   ;;  %s775_s6 = inlined_call_operand.vmem [shape: f32[1,32], index: 6, kind: input, shape index: {}]   ;;  %s776_s7 = inlined_call_operand.vmem [shape: f32[1,32], index: 7, kind: input, shape index: {}]   ;;  %s777_s8 = inlined_call_operand.<no memory space> [shape: f32[1], index: 8, kind: input, shape index: {}]   ;;  %s778_s9 = inlined_call_operand.hbm [shape: f32[2,64], index: 9, kind: output, shape index: {}]  }
   0x1   :  { %16 = vsyncpa [#allocation7], 0 }
   0x2   :  { %17 = vsyncpa [#allocation10], 0 }
   0x3   :  { %18 = vsyncpa [#allocation5], 0  ;;  %s598_s30 = smov [#allocation6]   ;;  %s599_s11 = smov [#allocation3]  }
   0x4   :  { %s36_s10 = sshll.u32 %s598_s30, 4  ;;  %s24_s12 = sshll.u32 %s599_s11, 4  ;;  %s37_s10 = int_to_ptr.vmem [resolvable:$true] %s36_s10  ;;  %s660_s12 = int_to_ptr.vmem [resolvable:$true] %s24_s12 }
   0x5   :  { %s480_s15 = scalar_lea.hbm %s770_s1, 256 }
   0x6   :  { %p481_p0 = scmp.ne.s32.totalorder %s770_s1, %s480_s15  ;;  %p484_p1 = scmp.lt.u32.totalorder %s480_s15, %s770_s1 }
   0x8   :  { %p486_p2 = pnand %p484_p1, %p481_p0 }
   0xa   :  { %489 = shalt.err (!%p486_p2)
}
   0xb   :  { %s490_s20 = scalar_lea.vmem %s37_s10, 256  ;;  %p495_p4 = scmp.lt.s32.totalorder %s37_s10, %s37_s10 }
   0xc   :  { %p491_p3 = scmp.ne.s32.totalorder %s37_s10, %s490_s20  ;;  %p496_p5 = scmp.lt.s32.totalorder %s490_s20, %s490_s20 }
   0xe   :  { %p497_p6 = por %p496_p5, %p495_p4 }
  0x10   :  { %p498_p7 = pnand %p497_p6, %p491_p3 }
  0x12   :  { %501 = shalt.err (!%p498_p7)
}
  0x13   :  { %s600_s21 = smov 128   ;;  %s601_s22 = smov 8  }
  0x14   :  { %42 = dma.hbm_to_vmem [thread:$0]  %s770_s1, 256, %s37_s10, [#allocation7], %s600_s21, %s600_s21, %s601_s22  }
  0x15   :  { %s502_s27 = scalar_lea.hbm %s769_s0, 256 }
  0x16   :  { %p503_p8 = scmp.ne.s32.totalorder %s769_s0, %s502_s27  ;;  %p506_p9 = scmp.lt.u32.totalorder %s502_s27, %s769_s0 }
  0x18   :  { %p508_p10 = pnand %p506_p9, %p503_p8 }
  0x1a   :  { %511 = shalt.err (!%p508_p10)
}
  0x1b   :  { %s512_s13 = scalar_lea.vmem %s660_s12, 256  ;;  %p517_p12 = scmp.lt.s32.totalorder %s660_s12, %s660_s12 }
  0x1c   :  { %p513_p11 = scmp.ne.s32.totalorder %s660_s12, %s512_s13  ;;  %p518_p13 = scmp.lt.s32.totalorder %s512_s13, %s512_s13 }
  0x1e   :  { %p519_p0 = por %p518_p13, %p517_p12 }
  0x20   :  { %p520_p1 = pnand %p519_p0, %p513_p11 }
  0x22   :  { %523 = shalt.err (!%p520_p1)
}
  0x23   :  { %30 = dma.hbm_to_vmem [thread:$0]  %s769_s0, 256, %s660_s12, [#allocation4], %s600_s21, %s600_s21, %s601_s22  }
  0x24   :  { %s602_s14 = smov [#allocation8]   ;;  %s603_s16 = smov [#allocation9]  }
  0x25   :  { %s52_s15 = sshll.u32 %s602_s14, 4  ;;  %s64_s17 = sshll.u32 %s603_s16, 4  ;;  %s53_s15 = int_to_ptr.vmem [resolvable:$true] %s52_s15  ;;  %s697_s17 = int_to_ptr.vmem [resolvable:$true] %s64_s17 }
  0x26   :  { %s524_s20 = scalar_lea.hbm %s773_s4, 512 }
  0x27   :  { %p525_p2 = scmp.ne.s32.totalorder %s773_s4, %s524_s20  ;;  %p528_p3 = scmp.lt.u32.totalorder %s524_s20, %s773_s4 }
  0x29   :  { %p530_p4 = pnand %p528_p3, %p525_p2 }
  0x2b   :  { %533 = shalt.err (!%p530_p4)
}
  0x2c   :  { %s534_s0 = scalar_lea.vmem %s53_s15, 512  ;;  %p539_p6 = scmp.lt.s32.totalorder %s53_s15, %s53_s15 }
  0x2d   :  { %p535_p5 = scmp.ne.s32.totalorder %s53_s15, %s534_s0  ;;  %p540_p7 = scmp.lt.s32.totalorder %s534_s0, %s534_s0 }
  0x2f   :  { %p541_p8 = por %p540_p7, %p539_p6 }
  0x31   :  { %p542_p9 = pnand %p541_p8, %p535_p5 }
  0x33   :  { %545 = shalt.err (!%p542_p9)
}
  0x34   :  { %58 = dma.hbm_to_vmem [thread:$0]  %s773_s4, 512, %s53_s15, [#allocation7], %s600_s21, %s600_s21, %s601_s22  }
  0x35   :  { %s546_s30 = scalar_lea.hbm %s774_s5, 512 }
  0x36   :  { %p547_p10 = scmp.ne.s32.totalorder %s774_s5, %s546_s30  ;;  %p550_p11 = scmp.lt.u32.totalorder %s546_s30, %s774_s5 }
  0x38   :  { %p552_p12 = pnand %p550_p11, %p547_p10 }
  0x3a   :  { %555 = shalt.err (!%p552_p12)
}
  0x3b   :  { %s556_s14 = scalar_lea.vmem %s697_s17, 512  ;;  %p561_p0 = scmp.lt.s32.totalorder %s697_s17, %s697_s17 }
  0x3c   :  { %p557_p13 = scmp.ne.s32.totalorder %s697_s17, %s556_s14  ;;  %p562_p1 = scmp.lt.s32.totalorder %s556_s14, %s556_s14 }
  0x3e   :  { %p563_p2 = por %p562_p1, %p561_p0 }
  0x40   :  { %p564_p3 = pnand %p563_p2, %p557_p13 }
  0x42   :  { %567 = shalt.err (!%p564_p3)
}
  0x43   :  { %70 = dma.hbm_to_vmem [thread:$0]  %s774_s5, 512, %s697_s17, [#allocation10], %s600_s21, %s600_s21, %s601_s22  }
  0x44   :  { %590 = dma.done.wait [#allocation4], 256  }
  0x45   :  { %591 = vsyncadd [#allocation4], 4294967040 }
  0x46   :  { %592 = dma.done.wait [#allocation7], 768  }
  0x47   :  { %593 = vsyncadd [#allocation7], 4294966528 }
  0x48   :  { %594 = dma.done.wait [#allocation10], 512  }
  0x49   :  { %595 = vsyncadd [#allocation10], 4294966784  ;;  %v604_v0 = vmov 0.0|0.0   ;;  %vm605_vm0 = vmmov 0   ;;  %v606_v1 = vmov 0.0   ;;  %v90_v2 = vld [vmem:[#allocation8] sm:$0xff]  ;;  %v259_v19 = vlaneseq }
  0x4a   :  { %438 = vmatprep.subr.bf16.mxu0 %v604_v0  ;;  %424 = vmatprep.mubr.msk.f32.mxu0 %vm605_vm0, %v606_v1  ;;  %v91_v3 = vld [vmem:[#allocation8 + $0x8] sm:$0xff]  ;;  %v170_v4 = vld [vmem:[#allocation9] sm:$0xff]  ;;  %v92_v7 = vld [vmem:[#allocation8 + $0x10] sm:$0xff]  ;;  %vm94_vm1 = vcmask 261120   ;;  %v607_v17 = vmov 1966171168   ;;  %v317_v46 = vstv %s777_s8 }
  0x4b   :  { %v439_v5 = vpack.c.bf16 %v91_v3, %v90_v2  ;;  %v171_v6 = vld [vmem:[#allocation9 + $0x8] sm:$0xff]  ;;  %v93_v8 = vld [vmem:[#allocation8 + $0x18] sm:$0xff]  ;;  %v172_v10 = vld [vmem:[#allocation9 + $0x10] sm:$0xff]  ;;  %v257_v18 = vunpack.c.l.s4 %v607_v17  ;;  %v260_v21 = vshrl.u32 %v259_v19, 7  ;;  %vm373_vm2 = vcmask 1041409   ;;  %s609_s8 = smov [#allocation11]  }
  0x4c   :  { %v444_v9 = vpack.c.bf16 %v171_v6, %v170_v4  ;;  %v173_v11 = vld [vmem:[#allocation9 + $0x18] sm:$0xff]  ;;  %v442_v12 = vpack.c.bf16 %v93_v8, %v92_v7  ;;  %v168_v14 = vld [vmem:[#allocation3] sm:$0xff]  ;;  %v169_v16 = vld [vmem:[#allocation3 + $0x8] sm:$0xff]  ;;  %s387_s19 = sshll.u32 %s609_s8, 4  ;;  %vm379_vm3 = vcmask 517120   ;;  %s388_s19 = int_to_ptr.vmem [resolvable:$true] %s387_s19 }
  0x4d   :  { %440 = vmatpush3.bf16.msra.mxu0 %v439_v5  ;;  %v448_v13 = vpack.c.bf16 %v173_v11, %v172_v10  ;;  %435 = vmatprep.mubr.msk.f32.mxu1 %vm94_vm1, %v168_v14  ;;  %v89_v15 = vld [vmem:[%s771_s2] sm:$0x3]  ;;  %v258_v20 = vunpack.c.0.s8 %v257_v18  ;;  %v280_v26 = vsub.s32 0, %v260_v21  ;;  %s568_s24 = scalar_lea.vmem %s388_s19, 32  ;;  %p573_p5 = scmp.lt.s32.totalorder %s388_s19, %s388_s19 }
  0x4e   :  { %441 = vmatprep.subr.bf16.mxu0 %v604_v0  ;;  %445 = vmatprep.subr.bf16.mxu1 %v444_v9  ;;  %v401_v33 = vld [vmem:[%s775_s6] ss:$0 sm:$0xff]  ;;  %p569_p4 = scmp.ne.s32.totalorder %s388_s19, %s568_s24  ;;  %p574_p6 = scmp.lt.s32.totalorder %s568_s24, %s568_s24 }
  0x4f   :  { %447 = vmatpush3.bf16.msra.mxu1 %v444_v9  ;;  %v261_v22 = vsub.s32 %v258_v20, %v260_v21  ;;  %v402_v38 = vld [vmem:[%s776_s7] ss:$0 sm:$0xff]  ;;  %s608_s7 = smov 32  }
  0x50   :  { %449 = vmatprep.subr.bf16.mxu1 %v448_v13  ;;  %p575_p7 = por %p574_p6, %p573_p5 }
  0x51   :  { %443 = vmatpush3.bf16.msra.mxu0 %v442_v12  ;;  %v352_v12 = vld [vmem:[#allocation6] sm:$0xff] }
  0x52   :  { %p576_p8 = pnand %p575_p7, %p569_p4 }
  0x53   :  { %451 = vmatpush3.bf16.msra.mxu1 %v448_v13 }
  0x54   :  { %425 = vmatmul.mubr.msk.f32.vlgmr.msra.gmra.mrb[0].mxu0 %vm94_vm1, %v89_v15 }
  0x56   :  { %436 = vmatmul.mubr.msk.f32.vlgmr.msra.gmra.mrb[0].mxu1 %vm94_vm1, %v169_v16  ;;  %v353_v16 = vld [vmem:[#allocation6 + $0x8] sm:$0xff] }
 0x127   :  { %v164_v23 = vpop.f32.mrb[0].mxu0 }
 0x128   :  { %v262_v24 = vrot.slane %v164_v23, %v261_v22  ;;  %v426_v25 = vpop.f32.mrb[1].mxu0 }
 0x129   :  { %v437_v27 = vpop.f32.mrb[0].mxu1 }
 0x12a   :  { %v263_v28 = vcombine.high %v262_v24, %v262_v24  ;;  %v270_v29 = vrot.slane %v262_v24, %v261_v22  ;;  %v246_v30 = vpop.f32.mrb[1].mxu1 }
 0x12c   :  { %v277_v31 = vrot.slane %v263_v28, %v261_v22  ;;  %v281_v32 = vrot.slane %v270_v29, %v280_v26 }
 0x12e   :  { %v285_v34 = vrot.slane %v277_v31, %v280_v26  ;;  %v288_v35 = vadd.f32 %v281_v32, %v246_v30 }
 0x130   :  { %v289_v36 = vadd.f32 %v437_v27, %v285_v34  ;;  %v297_v37 = vadd.f32 %v401_v33, %v288_v35  ;;  %v370_v34 = vld [vmem:[%s772_s3] sm:$0x3] }
 0x132   :  { %v298_v39 = vadd.f32 %v401_v33, %v289_v36  ;;  %v299_v40 = vmax.f32 %v297_v37, 0.0 }
 0x134   :  { %v300_v41 = vmax.f32 %v298_v39, 0.0  ;;  %v308_v42 = vmul.f32 %v402_v38, %v299_v40 }
 0x136   :  { %v310_v43 = vsel %vm94_vm1, %v308_v42, 0.0  ;;  %v309_v44 = vmul.f32 %v402_v38, %v300_v41 }
 0x137   :  { %311 = vadd.xlane.f32.xlu0 %v310_v43 }
 0x138   :  { %v313_v45 = vsel %vm94_vm1, %v309_v44, 0.0 }
 0x13b   :  { %314 = vadd.xlane.f32.xlu0 %v313_v45 }
 0x1c4   :  { %v312_v47 = vpop.xlane.xlu0 %311 }
 0x1c5   :  { %v318_v48 = vadd.f32 %v317_v46, %v312_v47 }
 0x1c7   :  { %v403_v49 = vmul.f32 -1.442695, %v318_v48 }
 0x1c8   :  { %v315_v50 = vpop.xlane.xlu0 %314 }
 0x1c9   :  { %464 = vpow2.f32 %v403_v49  ;;  %v319_v51 = vadd.f32 %v317_v46, %v315_v50 }
 0x1cb   :  { %v404_v52 = vmul.f32 -1.442695, %v319_v51 }
 0x1cd   :  { %466 = vpow2.f32 %v404_v52 }
 0x1d3   :  { %v465_v53 = vpop.eup %464 }
 0x1d4   :  { %v326_v54 = vadd.f32 1.0, %v465_v53 }
 0x1d6   :  { %468 = vrcp.f32 %v326_v54 }
 0x1d7   :  { %v467_v55 = vpop.eup %466 }
 0x1d8   :  { %v327_v56 = vadd.f32 1.0, %v467_v55 }
 0x1da   :  { %470 = vrcp.f32 %v327_v56 }
 0x1e0   :  { %v469_v57 = vpop.eup %468 }
 0x1e1   :  { %v332_v58 = vmul.f32 1.442695, %v469_v57 }
 0x1e3   :  { %472 = vpow2.f32 %v332_v58 }
 0x1e4   :  { %v471_v59 = vpop.eup %470 }
 0x1e5   :  { %v334_v60 = vmul.f32 1.442695, %v471_v59 }
 0x1e7   :  { %474 = vpow2.f32 %v334_v60 }
 0x1ed   :  { %v473_v61 = vpop.eup %472 }
 0x1ee   :  { %v336_v62 = vrot.slane %v473_v61, 4 }
 0x1f0   :  { %v337_v63 = vadd.f32 %v473_v61, %v336_v62 }
 0x1f1   :  { %v475_v0 = vpop.eup %474 }
 0x1f2   :  { %v338_v1 = vrot.slane %v337_v63, 2  ;;  %v342_v2 = vrot.slane %v475_v0, 4 }
 0x1f4   :  { %v339_v3 = vadd.f32 %v338_v1, %v337_v63  ;;  %v343_v4 = vadd.f32 %v475_v0, %v342_v2 }
 0x1f6   :  { %v340_v5 = vrot.slane %v339_v3, 1  ;;  %v344_v6 = vrot.slane %v343_v4, 2 }
 0x1f8   :  { %v341_v7 = vadd.f32 %v340_v5, %v339_v3  ;;  %v345_v8 = vadd.f32 %v344_v6, %v343_v4 }
 0x1fa   :  { %v346_v9 = vrot.slane %v345_v8, 1  ;;  %476 = vrcp.f32 %v341_v7 }
 0x1fc   :  { %v347_v10 = vadd.f32 %v346_v9, %v345_v8 }
 0x1fe   :  { %478 = vrcp.f32 %v347_v10 }
 0x204   :  { %v477_v11 = vpop.eup %476 }
 0x205   :  { %v350_v13 = vmul.f32 %v477_v11, %v473_v61 }
 0x207   :  { %v354_v14 = vmul.f32 %v352_v12, %v350_v13 }
 0x208   :  { %v479_v15 = vpop.eup %478 }
 0x209   :  { %v351_v17 = vmul.f32 %v479_v15, %v475_v0  ;;  %v356_v18 = vsel %vm94_vm1, %v354_v14, 0.0 }
 0x20a   :  { %v357_v19 = vrot.slane %v356_v18, 4 }
 0x20b   :  { %v355_v20 = vmul.f32 %v353_v16, %v351_v17 }
 0x20c   :  { %v358_v21 = vadd.f32 %v357_v19, %v356_v18 }
 0x20d   :  { %v363_v22 = vsel %vm94_vm1, %v355_v20, 0.0 }
 0x20e   :  { %v359_v23 = vrot.slane %v358_v21, 2  ;;  %v364_v24 = vrot.slane %v363_v22, 4 }
 0x210   :  { %v360_v25 = vadd.f32 %v359_v23, %v358_v21  ;;  %v365_v26 = vadd.f32 %v364_v24, %v363_v22 }
 0x212   :  { %v366_v27 = vrot.slane %v365_v26, 2  ;;  %v361_v28 = vrot.slane %v360_v25, 1 }
 0x214   :  { %v367_v29 = vadd.f32 %v366_v27, %v365_v26  ;;  %v362_v31 = vadd.f32 %v361_v28, %v360_v25 }
 0x216   :  { %v368_v30 = vrot.slane %v367_v29, 1 }
 0x218   :  { %v369_v32 = vadd.f32 %v368_v30, %v367_v29 }
 0x21a   :  { %v374_v33 = vsel %vm373_vm2, %v369_v32, %v362_v31 }
 0x21b   :  { %375 = vrot.lane.b32.xlu1 %v374_v33, %s608_s7 }
 0x28d   :  { %v376_v35 = vpop.permute.xlu1 %375 }
 0x28e   :  { %v378_v36 = vsel %vm94_vm1, %v370_v34, %v376_v35 }
 0x28f   :  { %380 = vst.msk [vmem:[#allocation11] sm:$0x3] %vm379_vm3, %v378_v36 }
 0x290   :  { %579 = shalt.err (!%p576_p8)
}
 0x291   :  { %s580_s0 = scalar_lea.hbm %s778_s9, 32 }
 0x292   :  { %p581_p9 = scmp.ne.s32.totalorder %s778_s9, %s580_s0  ;;  %p584_p10 = scmp.lt.u32.totalorder %s580_s0, %s778_s9 }
 0x294   :  { %p586_p11 = pnand %p584_p10, %p581_p9 }
 0x296   :  { %589 = shalt.err (!%p586_p11)
}
 0x297   :  { %390 = dma.vmem_to_hbm [thread:$0]  %s388_s19, 32, %s778_s9, [#allocation5]  }
 0x298   :  { %596 = dma.done.wait [#allocation5], 32  }
 0x299   :  { %597 = vsyncadd [#allocation5], 4294967264 }
 0x29a   :  { %394 = vsyncpa [#allocation4], 1 }
 0x29b   :  { %395 = vsyncpa [#allocation7], 1 }
 0x29c   :  { %396 = vsyncpa [#allocation10], 1 }
 0x29d   :  { %397 = vsyncpa [#allocation5], 1 }

</bundles_post_ra>
